<compile_context>
chip_gen: v7x
topology: tpu7x:2x2x1
jax: 0.10.0
libtpu: 0.0.40
codegen_flags: <defaults>
</compile_context>

<pallas_src>
import jax
import jax.numpy as jnp
from jax.experimental import pallas as pl
from jax.experimental.pallas import tpu as pltpu

LANE = 128
SUBLANE = 8
GRIDLESS_MAX_ROWS = 512  # above this, use the tiled "parallel" grid (2 TCs on v7x)


def _round_up(x, m):
    return (x + m - 1) // m * m


def _cdiv(a, b):
    return -(-a // b)


def _pad2d(a, rows, cols):
    r, c = a.shape
    return jnp.pad(a, ((0, rows - r), (0, cols - c)))


# ---------------------------------------------------------------------------
# Kernel: 3x (Linear + ReLU), fused packed head, reparameterize.
# bf16 MXU inputs, f32 accumulation, f32 elementwise. Single 128-lane-group
# output slab [ z | mu | log_var | 0... ].
# ---------------------------------------------------------------------------
def vae_encoder_kernel(
    x_ref,
    w1_ref, b1_ref,
    w2_ref, b2_ref,
    w3_ref, b3_ref,
    wh_ref, bh_ref,          # fused packed head: [l3_pad, 2*out_w]
    eps_ref,                 # [rows, out_w], eps in lanes [0, latent), zero elsewhere
    out_ref,                 # [rows, out_w] = z | mu | log_var | 0...
):
    f32 = jnp.float32
    cdt = w1_ref.dtype       # bf16 compute dtype for MXU inputs

    h = jnp.dot(x_ref[...].astype(cdt), w1_ref[...], preferred_element_type=f32) + b1_ref[...]
    h = jnp.maximum(h, 0.0)
    h = jnp.dot(h.astype(cdt), w2_ref[...], preferred_element_type=f32) + b2_ref[...]
    h = jnp.maximum(h, 0.0)
    h = jnp.dot(h.astype(cdt), w3_ref[...], preferred_element_type=f32) + b3_ref[...]
    h = jnp.maximum(h, 0.0)

    # One MXU push for both head layouts (N = 2*out_w).
    heads = jnp.dot(h.astype(cdt), wh_ref[...], preferred_element_type=f32) + bh_ref[...]

    ow = out_ref.shape[-1]
    mu_lv = heads[:, :ow]    # [ mu | mu | log_var | 0 ]  (128-aligned static slice)
    lv_z = heads[:, ow:]     # [ log_var | 0 | 0 | 0 ]    (log_var on eps's lanes)

    # z = eps * exp(0.5*log_var) + mu on lanes [0,latent); mu / log_var pass
    # through unchanged on their output lanes (eps is zero there, exp(0)=1).
    out = eps_ref[...] * jnp.exp(0.5 * lv_z) + mu_lv
    out_ref[...] = out.astype(out_ref.dtype)


# ---------------------------------------------------------------------------
# Parameter packing.
# ---------------------------------------------------------------------------
def pack_params(params, weight_dtype=jnp.bfloat16):
    in_dim, l1 = params["w1"].shape
    l2 = params["w2"].shape[1]
    l3 = params["w3"].shape[1]
    latent = params["wmu"].shape[1]

    l1_p = _round_up(l1, LANE)
    l2_p = _round_up(l2, LANE)
    l3_p = _round_up(l3, LANE)
    out_w = _round_up(3 * latent, LANE)

    # Hidden layers: w1 fan_in stays at the native in_dim (x is not padded);
    # all fan_out / lane dims padded to 128 multiples for dense MXU columns.
    w1 = _pad2d(params["w1"], in_dim, l1_p).astype(weight_dtype)
    b1 = _pad2d(params["b1"], 1, l1_p).astype(jnp.float32)
    w2 = _pad2d(params["w2"], l1_p, l2_p).astype(weight_dtype)
    b2 = _pad2d(params["b2"], 1, l2_p).astype(jnp.float32)
    w3 = _pad2d(params["w3"], l2_p, l3_p).astype(weight_dtype)
    b3 = _pad2d(params["b3"], 1, l3_p).astype(jnp.float32)

    # Fused packed head (see kernel docstring): columns [A | B].
    wmu = _pad2d(params["wmu"], l3_p, latent)
    wlv = _pad2d(params["wlv"], l3_p, latent)
    za = jnp.zeros((l3_p, out_w - 3 * latent), jnp.float32)
    zb = jnp.zeros((l3_p, out_w - latent), jnp.float32)
    wh = jnp.concatenate([wmu, wmu, wlv, za, wlv, zb], axis=1).astype(weight_dtype)

    bmu = _pad2d(params["bmu"], 1, latent)
    blv = _pad2d(params["blv"], 1, latent)
    bza = jnp.zeros((1, out_w - 3 * latent), jnp.float32)
    bzb = jnp.zeros((1, out_w - latent), jnp.float32)
    bh = jnp.concatenate([bmu, bmu, blv, bza, blv, bzb], axis=1).astype(jnp.float32)

    packed = (w1, b1, w2, b2, w3, b3, wh, bh)
    dims = dict(in_dim=in_dim, latent=latent, out_w=out_w)
    return packed, dims


# ---------------------------------------------------------------------------
# Wrapper.
# ---------------------------------------------------------------------------
def vae_encoder_forward(x, packed_params, dims, eps, *, block_b=1024):
    """Full VAEEncoder forward in one Pallas call. Returns (z, mu, log_var)."""
    B, in_dim = x.shape
    assert in_dim == dims["in_dim"]
    latent = dims["latent"]
    out_w = dims["out_w"]

    x = x.astype(jnp.float32)
    # eps placed in lanes [0, latent) of an out_w-lane slab, zero elsewhere.
    eps_p = jnp.pad(eps.astype(jnp.float32), ((0, 0), (0, out_w - latent)))

    inputs = (x, *packed_params, eps_p)
    out_shape = jax.ShapeDtypeStruct((B, out_w), jnp.float32)

    if B <= GRIDLESS_MAX_ROWS:
        # Single block: everything is VMEM-resident; skip grid/pipeline overhead.
        vmem = pl.BlockSpec(memory_space=pltpu.MemorySpace.VMEM)
        out = pl.pallas_call(
            kernel := vae_encoder_kernel,
            out_shape=out_shape,
            in_specs=[vmem] * len(inputs),
            out_specs=vmem,
        )(*inputs)
    else:
        # Tiled batch: >= 2 grid steps (keeps both v7x TCs busy), block rows
        # chosen close to B/num_blocks; Pallas clips the tail block so no
        # garbage rows are ever streamed. Weights use constant index maps
        # (VMEM-resident across steps).
        num_blocks = max(2, _cdiv(B, block_b))
        block_rows = _round_up(_cdiv(B, num_blocks), SUBLANE)
        grid = (_cdiv(B, block_rows),)

        def batch_spec(cols):
            return pl.BlockSpec((block_rows, cols), lambda i: (i, 0))

        def const_spec(a):
            return pl.BlockSpec(a.shape, lambda i: (0, 0))

        out = pl.pallas_call(
            vae_encoder_kernel,
            out_shape=out_shape,
            grid=grid,
            in_specs=[batch_spec(in_dim)]
                     + [const_spec(a) for a in packed_params]
                     + [batch_spec(out_w)],
            out_specs=batch_spec(out_w),
            compiler_params=pltpu.CompilerParams(
                dimension_semantics=("parallel",)),
        )(*inputs)

    # One contiguous slice of the slab, then split the small result.
    core = out[:, :3 * latent]
    z = core[:, :latent]
    mu = core[:, latent:2 * latent]
    log_var = core[:, 2 * latent:]
    return z, mu, log_var


# ---------------------------------------------------------------------------
# Torch-Linear-style init: U(-1/sqrt(fan_in), 1/sqrt(fan_in)).
# Weights stored as [fan_in, fan_out] (transposed vs torch), biases as [1, fan_out].
# ---------------------------------------------------------------------------
def init_params(key, in_dim, l1, l2, l3, latent):
    def linear(k, fan_in, fan_out):
        kw, kb = jax.random.split(k)
        bound = 1.0 / jnp.sqrt(fan_in)
        w = jax.random.uniform(kw, (fan_in, fan_out), jnp.float32, -bound, bound)
        b = jax.random.uniform(kb, (1, fan_out), jnp.float32, -bound, bound)
        return w, b

    k1, k2, k3, kmu, klv = jax.random.split(key, 5)
    w1, b1 = linear(k1, in_dim, l1)
    w2, b2 = linear(k2, l1, l2)
    w3, b3 = linear(k3, l2, l3)
    wmu, bmu = linear(kmu, l3, latent)
    wlv, blv = linear(klv, l3, latent)
    return dict(w1=w1, b1=b1, w2=w2, b2=b2, w3=w3, b3=b3,
                wmu=wmu, bmu=bmu, wlv=wlv, blv=blv)


if __name__ == "__main__":
    # Small shapes consistent with the module's forward (flat feature input).
    B = 8
    in_dim, l1, l2, l3, latent = 64, 128, 96, 64, 32

    key = jax.random.PRNGKey(0)
    kx, keps, kp, kx2, keps2 = jax.random.split(key, 5)

    x = jax.random.normal(kx, (B, in_dim), jnp.float32)
    eps = jax.random.normal(keps, (B, latent), jnp.float32)  # torch.randn_like(std)
    params = init_params(kp, in_dim, l1, l2, l3, latent)
    packed, dims = pack_params(params)

    # Pure-JAX reference emulating the kernel's bf16-input / f32-accumulate
    # matmuls exactly (vs a pure-f32 torch forward the error is ~1e-2 relative,
    # from the bf16 weight quantization).
    def ref(x_, p, eps_):
        bf = lambda a: a.astype(jnp.bfloat16).astype(jnp.float32)
        h = jnp.maximum(jnp.dot(bf(x_), bf(p["w1"])) + p["b1"], 0.0)
        h = jnp.maximum(jnp.dot(bf(h), bf(p["w2"])) + p["b2"], 0.0)
        h = jnp.maximum(jnp.dot(bf(h), bf(p["w3"])) + p["b3"], 0.0)
        mu_r = jnp.dot(bf(h), bf(p["wmu"])) + p["bmu"]
        lv_r = jnp.dot(bf(h), bf(p["wlv"])) + p["blv"]
        return eps_ * jnp.exp(0.5 * lv_r) + mu_r, mu_r, lv_r

    # --- small batch: gridless single-block path ---
    z, mu, log_var = vae_encoder_forward(x, packed, dims, eps)
    jax.block_until_ready((z, mu, log_var))
    assert z.shape == (B, latent) and mu.shape == (B, latent) and log_var.shape == (B, latent)
    z_r, mu_r, lv_r = ref(x, params, eps)
    assert jnp.allclose(z, z_r, atol=2e-3, rtol=2e-3)
    assert jnp.allclose(mu, mu_r, atol=2e-3, rtol=2e-3)
    assert jnp.allclose(log_var, lv_r, atol=2e-3, rtol=2e-3)

    # --- larger batch: tiled "parallel" grid path, with a clipped tail block ---
    B2 = 650
    x2 = jax.random.normal(kx2, (B2, in_dim), jnp.float32)
    eps2 = jax.random.normal(keps2, (B2, latent), jnp.float32)
    z2, mu2, lv2 = vae_encoder_forward(x2, packed, dims, eps2, block_b=1024)
    jax.block_until_ready((z2, mu2, lv2))
    z2_r, mu2_r, lv2_r = ref(x2, params, eps2)
    assert jnp.allclose(z2, z2_r, atol=2e-3, rtol=2e-3)
    assert jnp.allclose(mu2, mu2_r, atol=2e-3, rtol=2e-3)
    assert jnp.allclose(lv2, lv2_r, atol=2e-3, rtol=2e-3)

    print("KERNEL_OK")
</pallas_src>

<mosaic_0001>
module attributes {stable_mosaic.version = 11 : i64} {
  func.func @vae_encoder_kernel(%arg0: memref<8x64xf32, #tpu.memory_space<vmem>>, %arg1: memref<64x128xbf16, #tpu.memory_space<vmem>>, %arg2: memref<1x128xf32, #tpu.memory_space<vmem>>, %arg3: memref<128x128xbf16, #tpu.memory_space<vmem>>, %arg4: memref<1x128xf32, #tpu.memory_space<vmem>>, %arg5: memref<128x128xbf16, #tpu.memory_space<vmem>>, %arg6: memref<1x128xf32, #tpu.memory_space<vmem>>, %arg7: memref<128x256xbf16, #tpu.memory_space<vmem>>, %arg8: memref<1x256xf32, #tpu.memory_space<vmem>>, %arg9: memref<8x128xf32, #tpu.memory_space<vmem>>, %arg10: memref<8x128xf32, #tpu.memory_space<vmem>>) attributes {dimension_semantics = [], scalar_prefetch = 0 : i64, scratch_operands = 0 : i64, tpu.core_type = #tpu.core_type<tc>} {
    %c0 = arith.constant 0 : index
    %c0_0 = arith.constant 0 : index
    %0 = vector.load %arg0[%c0, %c0_0] : memref<8x64xf32, #tpu.memory_space<vmem>>, vector<8x64xf32>
    %1 = arith.truncf %0 : vector<8x64xf32> to vector<8x64xbf16>
    %c0_1 = arith.constant 0 : index
    %c0_2 = arith.constant 0 : index
    %2 = vector.load %arg1[%c0_1, %c0_2] : memref<64x128xbf16, #tpu.memory_space<vmem>>, vector<64x128xbf16>
    %cst = arith.constant dense<0.000000e+00> : vector<8x128xf32>
    %3 = tpu.matmul %1, %2, %cst {dimension_numbers = #tpu.dot_dimension_numbers<[1], [0], [0], [1], [0, 0, 1, 1], [], []>} : vector<8x64xbf16>, vector<64x128xbf16>, vector<8x128xf32> -> vector<8x128xf32>
    %c0_3 = arith.constant 0 : index
    %c0_4 = arith.constant 0 : index
    %4 = vector.load %arg2[%c0_3, %c0_4] : memref<1x128xf32, #tpu.memory_space<vmem>>, vector<1x128xf32>
    %5 = vector.broadcast %4 : vector<1x128xf32> to vector<8x128xf32>
    %6 = arith.addf %3, %5 : vector<8x128xf32>
    %cst_5 = arith.constant 0.000000e+00 : f32
    %7 = vector.broadcast %cst_5 : f32 to vector<8x128xf32>
    %8 = arith.maximumf %6, %7 : vector<8x128xf32>
    %9 = arith.truncf %8 : vector<8x128xf32> to vector<8x128xbf16>
    %c0_6 = arith.constant 0 : index
    %c0_7 = arith.constant 0 : index
    %10 = vector.load %arg3[%c0_6, %c0_7] : memref<128x128xbf16, #tpu.memory_space<vmem>>, vector<128x128xbf16>
    %cst_8 = arith.constant dense<0.000000e+00> : vector<8x128xf32>
    %11 = tpu.matmul %9, %10, %cst_8 {dimension_numbers = #tpu.dot_dimension_numbers<[1], [0], [0], [1], [0, 0, 1, 1], [], []>} : vector<8x128xbf16>, vector<128x128xbf16>, vector<8x128xf32> -> vector<8x128xf32>
    %c0_9 = arith.constant 0 : index
    %c0_10 = arith.constant 0 : index
    %12 = vector.load %arg4[%c0_9, %c0_10] : memref<1x128xf32, #tpu.memory_space<vmem>>, vector<1x128xf32>
    %13 = vector.broadcast %12 : vector<1x128xf32> to vector<8x128xf32>
    %14 = arith.addf %11, %13 : vector<8x128xf32>
    %cst_11 = arith.constant 0.000000e+00 : f32
    %15 = vector.broadcast %cst_11 : f32 to vector<8x128xf32>
    %16 = arith.maximumf %14, %15 : vector<8x128xf32>
    %17 = arith.truncf %16 : vector<8x128xf32> to vector<8x128xbf16>
    %c0_12 = arith.constant 0 : index
    %c0_13 = arith.constant 0 : index
    %18 = vector.load %arg5[%c0_12, %c0_13] : memref<128x128xbf16, #tpu.memory_space<vmem>>, vector<128x128xbf16>
    %cst_14 = arith.constant dense<0.000000e+00> : vector<8x128xf32>
    %19 = tpu.matmul %17, %18, %cst_14 {dimension_numbers = #tpu.dot_dimension_numbers<[1], [0], [0], [1], [0, 0, 1, 1], [], []>} : vector<8x128xbf16>, vector<128x128xbf16>, vector<8x128xf32> -> vector<8x128xf32>
    %c0_15 = arith.constant 0 : index
    %c0_16 = arith.constant 0 : index
    %20 = vector.load %arg6[%c0_15, %c0_16] : memref<1x128xf32, #tpu.memory_space<vmem>>, vector<1x128xf32>
    %21 = vector.broadcast %20 : vector<1x128xf32> to vector<8x128xf32>
    %22 = arith.addf %19, %21 : vector<8x128xf32>
    %cst_17 = arith.constant 0.000000e+00 : f32
    %23 = vector.broadcast %cst_17 : f32 to vector<8x128xf32>
    %24 = arith.maximumf %22, %23 : vector<8x128xf32>
    %25 = arith.truncf %24 : vector<8x128xf32> to vector<8x128xbf16>
    %c0_18 = arith.constant 0 : index
    %c0_19 = arith.constant 0 : index
    %26 = vector.load %arg7[%c0_18, %c0_19] : memref<128x256xbf16, #tpu.memory_space<vmem>>, vector<128x256xbf16>
    %cst_20 = arith.constant dense<0.000000e+00> : vector<8x256xf32>
    %27 = tpu.matmul %25, %26, %cst_20 {dimension_numbers = #tpu.dot_dimension_numbers<[1], [0], [0], [1], [0, 0, 1, 1], [], []>} : vector<8x128xbf16>, vector<128x256xbf16>, vector<8x256xf32> -> vector<8x256xf32>
    %c0_21 = arith.constant 0 : index
    %c0_22 = arith.constant 0 : index
    %28 = vector.load %arg8[%c0_21, %c0_22] : memref<1x256xf32, #tpu.memory_space<vmem>>, vector<1x256xf32>
    %29 = vector.broadcast %28 : vector<1x256xf32> to vector<8x256xf32>
    %30 = arith.addf %27, %29 : vector<8x256xf32>
    %31 = vector.extract_strided_slice %30 {offsets = [0, 0], sizes = [8, 128], strides = [1, 1]} : vector<8x256xf32> to vector<8x128xf32>
    %32 = vector.extract_strided_slice %30 {offsets = [0, 128], sizes = [8, 128], strides = [1, 1]} : vector<8x256xf32> to vector<8x128xf32>
    %c0_23 = arith.constant 0 : index
    %c0_24 = arith.constant 0 : index
    %33 = vector.load %arg9[%c0_23, %c0_24] : memref<8x128xf32, #tpu.memory_space<vmem>>, vector<8x128xf32>
    %cst_25 = arith.constant 5.000000e-01 : f32
    %34 = vector.broadcast %cst_25 : f32 to vector<8x128xf32>
    %35 = arith.mulf %34, %32 : vector<8x128xf32>
    %36 = math.exp %35 : vector<8x128xf32>
    %37 = arith.mulf %33, %36 : vector<8x128xf32>
    %38 = arith.addf %37, %31 : vector<8x128xf32>
    %c0_26 = arith.constant 0 : index
    %c0_27 = arith.constant 0 : index
    %39 = vector.load %arg10[%c0_26, %c0_27] : memref<8x128xf32, #tpu.memory_space<vmem>>, vector<8x128xf32>
    tpu.vector_store %arg10[%c0_26, %c0_27], %38 {strides = array<i32>} : memref<8x128xf32, #tpu.memory_space<vmem>>, vector<8x128xf32>,
    return
  }
}

</mosaic_0001>

<bundles_post_ra>
// kernel: tpu_custom_call.1
= control target key start
LH: loop header
LB: loop body
LE: loop exit
PB: predicated region body
PF: predicated region fallthrough
CT: control target
= control target key end

     0   :  { %15 = vsyncpa [#allocation3], 0  ;;  %s1093_s0 = inlined_call_operand.hbm [shape: f32[8,64], index: 0, kind: input, shape index: {}]   ;;  %s1094_s1 = inlined_call_operand.hbm [shape: bf16[64,128], index: 1, kind: input, shape index: {}]   ;;  %s1095_s2 = inlined_call_operand.vmem [shape: f32[1,128], index: 2, kind: input, shape index: {}]   ;;  %s1096_s3 = inlined_call_operand.hbm [shape: bf16[128,128], index: 3, kind: input, shape index: {}]   ;;  %s1097_s4 = inlined_call_operand.vmem [shape: f32[1,128], index: 4, kind: input, shape index: {}]   ;;  %s1098_s5 = inlined_call_operand.hbm [shape: bf16[128,128], index: 5, kind: input, shape index: {}]   ;;  %s1099_s6 = inlined_call_operand.vmem [shape: f32[1,128], index: 6, kind: input, shape index: {}]   ;;  %s1100_s7 = inlined_call_operand.hbm [shape: bf16[128,256], index: 7, kind: input, shape index: {}]   ;;  %s1101_s8 = inlined_call_operand.vmem [shape: f32[1,256], index: 8, kind: input, shape index: {}]   ;;  %s1102_s9 = inlined_call_operand.vmem [shape: f32[8,128], index: 9, kind: input, shape index: {}]   ;;  %s1103_s10 = inlined_call_operand.hbm [shape: f32[8,128], index: 10, kind: output, shape index: {}]  }
   0x1   :  { %16 = vsyncpa [#allocation6], 0 }
   0x2   :  { %17 = vsyncpa [#allocation9], 0 }
   0x3   :  { %18 = vsyncpa [#allocation4], 0  ;;  %s903_s13 = smov [#allocation5]   ;;  %s763_s17 = scalar_lea.hbm %s1094_s1, 512 }
   0x4   :  { %s34_s14 = sshll.u32 %s903_s13, 4  ;;  %p764_p0 = scmp.ne.s32.totalorder %s1094_s1, %s763_s17  ;;  %s35_s14 = int_to_ptr.vmem [resolvable:$true] %s34_s14 }
   0x5   :  { %p767_p1 = scmp.lt.u32.totalorder %s763_s17, %s1094_s1 }
   0x7   :  { %p769_p2 = pnand %p767_p1, %p764_p0 }
   0x9   :  { %772 = shalt.err (!%p769_p2)
}
   0xa   :  { %s773_s22 = scalar_lea.vmem %s35_s14, 512  ;;  %p778_p4 = scmp.lt.s32.totalorder %s35_s14, %s35_s14 }
   0xb   :  { %p774_p3 = scmp.ne.s32.totalorder %s35_s14, %s773_s22  ;;  %p779_p5 = scmp.lt.s32.totalorder %s773_s22, %s773_s22 }
   0xd   :  { %p780_p6 = por %p779_p5, %p778_p4 }
   0xf   :  { %p781_p7 = pnand %p780_p6, %p774_p3 }
  0x11   :  { %784 = shalt.err (!%p781_p7)
}
  0x12   :  { %s904_s23 = smov 64   ;;  %s905_s24 = smov 4  }
  0x13   :  { %40 = dma.hbm_to_vmem [thread:$0]  %s1094_s1, 512, %s35_s14, [#allocation6], %s904_s23, %s904_s23, %s905_s24  }
  0x14   :  { %s906_s27 = smov [#allocation8]   ;;  %s907_s29 = smov [#allocation2]  }
  0x15   :  { %s62_s28 = sshll.u32 %s906_s27, 4  ;;  %s25_s30 = sshll.u32 %s907_s29, 4  ;;  %s63_s28 = int_to_ptr.vmem [resolvable:$true] %s62_s28  ;;  %s26_s30 = int_to_ptr.vmem [resolvable:$true] %s25_s30 }
  0x16   :  { %s785_s13 = scalar_lea.hbm %s1098_s5, 1024 }
  0x17   :  { %p786_p8 = scmp.ne.s32.totalorder %s1098_s5, %s785_s13  ;;  %p789_p9 = scmp.lt.u32.totalorder %s785_s13, %s1098_s5 }
  0x19   :  { %p791_p10 = pnand %p789_p9, %p786_p8 }
  0x1b   :  { %794 = shalt.err (!%p791_p10)
}
  0x1c   :  { %s795_s1 = scalar_lea.vmem %s63_s28, 1024  ;;  %p800_p12 = scmp.lt.s32.totalorder %s63_s28, %s63_s28 }
  0x1d   :  { %p796_p11 = scmp.ne.s32.totalorder %s63_s28, %s795_s1  ;;  %p801_p13 = scmp.lt.s32.totalorder %s795_s1, %s795_s1 }
  0x1f   :  { %p802_p0 = por %p801_p13, %p800_p12 }
  0x21   :  { %p803_p1 = pnand %p802_p0, %p796_p11 }
  0x23   :  { %806 = shalt.err (!%p803_p1)
}
  0x24   :  { %68 = dma.hbm_to_vmem [thread:$0]  %s1098_s5, 1024, %s63_s28, [#allocation9], %s904_s23, %s904_s23, %s905_s24  }
  0x25   :  { %s807_s22 = scalar_lea.hbm %s1093_s0, 128 }
  0x26   :  { %p808_p2 = scmp.ne.s32.totalorder %s1093_s0, %s807_s22  ;;  %p811_p3 = scmp.lt.u32.totalorder %s807_s22, %s1093_s0 }
  0x28   :  { %p813_p4 = pnand %p811_p3, %p808_p2 }
  0x2a   :  { %816 = shalt.err (!%p813_p4)
}
  0x2b   :  { %s817_s11 = scalar_lea.vmem %s26_s30, 128  ;;  %p822_p6 = scmp.lt.s32.totalorder %s26_s30, %s26_s30 }
  0x2c   :  { %p818_p5 = scmp.ne.s32.totalorder %s26_s30, %s817_s11  ;;  %p823_p7 = scmp.lt.s32.totalorder %s817_s11, %s817_s11 }
  0x2e   :  { %p824_p8 = por %p823_p7, %p822_p6 }
  0x30   :  { %p825_p9 = pnand %p824_p8, %p818_p5 }
  0x32   :  { %828 = shalt.err (!%p825_p9)
}
  0x33   :  { %28 = dma.hbm_to_vmem [thread:$0]  %s1093_s0, 128, %s26_s30, [#allocation3]  }
  0x34   :  { %s908_s12 = smov [#allocation7]   ;;  %s909_s15 = smov [#allocation10]  }
  0x35   :  { %s48_s13 = sshll.u32 %s908_s12, 4  ;;  %s76_s16 = sshll.u32 %s909_s15, 4  ;;  %s49_s13 = int_to_ptr.vmem [resolvable:$true] %s48_s13  ;;  %s77_s16 = int_to_ptr.vmem [resolvable:$true] %s76_s16 }
  0x36   :  { %s829_s1 = scalar_lea.hbm %s1096_s3, 1024 }
  0x37   :  { %p830_p10 = scmp.ne.s32.totalorder %s1096_s3, %s829_s1  ;;  %p833_p11 = scmp.lt.u32.totalorder %s829_s1, %s1096_s3 }
  0x39   :  { %p835_p12 = pnand %p833_p11, %p830_p10 }
  0x3b   :  { %838 = shalt.err (!%p835_p12)
}
  0x3c   :  { %s839_s0 = scalar_lea.vmem %s49_s13, 1024  ;;  %p844_p0 = scmp.lt.s32.totalorder %s49_s13, %s49_s13 }
  0x3d   :  { %p840_p13 = scmp.ne.s32.totalorder %s49_s13, %s839_s0  ;;  %p845_p1 = scmp.lt.s32.totalorder %s839_s0, %s839_s0 }
  0x3f   :  { %p846_p2 = por %p845_p1, %p844_p0 }
  0x41   :  { %p847_p3 = pnand %p846_p2, %p840_p13 }
  0x43   :  { %850 = shalt.err (!%p847_p3)
}
  0x44   :  { %54 = dma.hbm_to_vmem [thread:$0]  %s1096_s3, 1024, %s49_s13, [#allocation6], %s904_s23, %s904_s23, %s905_s24  }
  0x45   :  { %s851_s27 = scalar_lea.hbm %s1100_s7, 2048 }
  0x46   :  { %p852_p4 = scmp.ne.s32.totalorder %s1100_s7, %s851_s27  ;;  %p855_p5 = scmp.lt.u32.totalorder %s851_s27, %s1100_s7 }
  0x48   :  { %p857_p6 = pnand %p855_p5, %p852_p4 }
  0x4a   :  { %860 = shalt.err (!%p857_p6)
}
  0x4b   :  { %s861_s12 = scalar_lea.vmem %s77_s16, 2048  ;;  %p866_p8 = scmp.lt.s32.totalorder %s77_s16, %s77_s16 }
  0x4c   :  { %p862_p7 = scmp.ne.s32.totalorder %s77_s16, %s861_s12  ;;  %p867_p9 = scmp.lt.s32.totalorder %s861_s12, %s861_s12 }
  0x4e   :  { %p868_p10 = por %p867_p9, %p866_p8 }
  0x50   :  { %p869_p11 = pnand %p868_p10, %p862_p7 }
  0x52   :  { %872 = shalt.err (!%p869_p11)
}
  0x53   :  { %s910_s3 = smov 128   ;;  %s911_s23 = smov 8  }
  0x54   :  { %82 = dma.hbm_to_vmem [thread:$0]  %s1100_s7, 2048, %s77_s16, [#allocation9], %s910_s3, %s910_s3, %s911_s23  }
  0x55   :  { %895 = dma.done.wait [#allocation3], 128  }
  0x56   :  { %896 = vsyncadd [#allocation3], 4294967168 }
  0x57   :  { %897 = dma.done.wait [#allocation6], 1536  }
  0x58   :  { %898 = vsyncadd [#allocation6], 4294965760 }
  0x59   :  { %899 = dma.done.wait [#allocation9], 3072  }
  0x5a   :  { %900 = vsyncadd [#allocation9], 4294964224  ;;  %v912_v0 = vmov 0.0   ;;  %vm913_vm0 = vmmov 0   ;;  %v717_v1 = vld [vmem:[#allocation5] sm:$0xff]   ;;  %v718_v2 = vld [vmem:[#allocation5 + $0x8] sm:$0xff]  }
  0x5b   :  { %652 = vmatprep.subr.bf16.mxu0 %v912_v0  ;;  %660 = vmatprep.mubr.msk.bf16.mxu0 %vm913_vm0, %v912_v0  ;;  %v721_v3 = vld [vmem:[#allocation7] sm:$0xff]   ;;  %v719_v4 = vld [vmem:[#allocation5 + $0x10] sm:$0xff]   ;;  %v722_v5 = vld [vmem:[#allocation7 + $0x8] sm:$0xff]   ;;  %vm144_vm1 = vcmask 523264   ;;  %v914_v55 = vmov 0   ;;  %s915_s19 = smov [#allocation11]  }
  0x5c   :  { %664 = vmatprep.subr.bf16.mxu1 %v912_v0  ;;  %680 = vmatprep.mubr.msk.bf16.mxu1 %vm913_vm0, %v912_v0  ;;  %v720_v6 = vld [vmem:[#allocation5 + $0x18] sm:$0xff]   ;;  %v723_v8 = vld [vmem:[#allocation7 + $0x10] sm:$0xff]   ;;  %v725_v11 = vld [vmem:[#allocation7 + $0x20] sm:$0xff]   ;;  %s578_s20 = sshll.u32 %s915_s19, 4  ;;  %s579_s20 = int_to_ptr.vmem [resolvable:$true] %s578_s20 }
  0x5d   :  { %653 = vmatpush3.bf16.msra.mxu0 %v717_v1  ;;  %665 = vmatpush3.bf16.msra.mxu1 %v721_v3  ;;  %v103_v7 = vld [vmem:[#allocation2] sm:$0xff]  ;;  %v726_v12 = vld [vmem:[#allocation7 + $0x28] sm:$0xff]   ;;  %v727_v13 = vld [vmem:[#allocation7 + $0x30] sm:$0xff]   ;;  %p878_p13 = scmp.lt.s32.totalorder %s579_s20, %s579_s20 }
  0x5e   :  { %654 = vmatprep.subr.bf16.mxu0 %v912_v0  ;;  %666 = vmatprep.subr.bf16.mxu1 %v912_v0  ;;  %v104_v9 = vpack.c.bf16 %v103_v7, %v103_v7  ;;  %v724_v10 = vld [vmem:[#allocation7 + $0x18] sm:$0xff]   ;;  %v729_v15 = vld [vmem:[#allocation8] sm:$0xff]   ;;  %v730_v16 = vld [vmem:[#allocation8 + $0x8] sm:$0xff]  }
  0x5f   :  { %v728_v14 = vld [vmem:[#allocation7 + $0x38] sm:$0xff]   ;;  %v731_v17 = vld [vmem:[#allocation8 + $0x10] sm:$0xff]   ;;  %v733_v19 = vld [vmem:[#allocation8 + $0x20] sm:$0xff]  }
  0x60   :  { %v732_v18 = vld [vmem:[#allocation8 + $0x18] sm:$0xff]   ;;  %v734_v20 = vld [vmem:[#allocation8 + $0x28] sm:$0xff]   ;;  %v735_v29 = vld [vmem:[#allocation8 + $0x30] sm:$0xff]  }
  0x61   :  { %655 = vmatpush3.bf16.msra.mxu0 %v718_v2  ;;  %667 = vmatpush3.bf16.msra.mxu1 %v722_v5  ;;  %v589_v21 = vld [vmem:[%s1095_s2] ss:$0 sm:$0xff]  ;;  %v737_v31 = vld [vmem:[#allocation10] ss:$8 sps:$4 sm:$0xff]   ;;  %v739_v32 = vld [vmem:[#allocation10 + $0x4] ss:$8 sps:$4 sm:$0xff]  }
  0x62   :  { %656 = vmatprep.subr.bf16.mxu0 %v912_v0  ;;  %668 = vmatprep.subr.bf16.mxu1 %v912_v0  ;;  %v736_v30 = vld [vmem:[#allocation8 + $0x38] sm:$0xff]   ;;  %v745_v35 = vld [vmem:[#allocation10 + $0x24] ss:$8 sps:$4 sm:$0xff]   ;;  %v743_v36 = vld [vmem:[#allocation10 + $0x20] ss:$8 sps:$4 sm:$0xff]  }
  0x63   :  { %v742_v33 = vld [vmem:[#allocation10 + $0x14] ss:$8 sps:$4 sm:$0xff]   ;;  %v740_v34 = vld [vmem:[#allocation10 + $0x10] ss:$8 sps:$4 sm:$0xff]   ;;  %v751_v39 = vld [vmem:[#allocation10 + $0x44] ss:$8 sps:$4 sm:$0xff]  }
  0x64   :  { %v748_v37 = vld [vmem:[#allocation10 + $0x34] ss:$8 sps:$4 sm:$0xff]   ;;  %v746_v38 = vld [vmem:[#allocation10 + $0x30] ss:$8 sps:$4 sm:$0xff]   ;;  %v749_v40 = vld [vmem:[#allocation10 + $0x40] ss:$8 sps:$4 sm:$0xff]  }
  0x65   :  { %657 = vmatpush3.bf16.msra.mxu0 %v719_v4  ;;  %669 = vmatpush3.bf16.msra.mxu1 %v723_v8  ;;  %v754_v41 = vld [vmem:[#allocation10 + $0x54] ss:$8 sps:$4 sm:$0xff]   ;;  %v752_v42 = vld [vmem:[#allocation10 + $0x50] ss:$8 sps:$4 sm:$0xff]   ;;  %v757_v43 = vld [vmem:[#allocation10 + $0x64] ss:$8 sps:$4 sm:$0xff]  }
  0x66   :  { %658 = vmatprep.subr.bf16.mxu0 %v912_v0  ;;  %670 = vmatprep.subr.bf16.mxu1 %v912_v0  ;;  %v755_v44 = vld [vmem:[#allocation10 + $0x60] ss:$8 sps:$4 sm:$0xff]   ;;  %v595_v45 = vld [vmem:[%s1097_s4] ss:$0 sm:$0xff]  ;;  %v760_v53 = vld [vmem:[#allocation10 + $0x74] ss:$8 sps:$4 sm:$0xff]  }
  0x67   :  { %v758_v54 = vld [vmem:[#allocation10 + $0x70] ss:$8 sps:$4 sm:$0xff]  }
  0x68   :  { %v604_v56 = vld [vmem:[%s1099_s6] ss:$0 sm:$0xff] }
  0x69   :  { %659 = vmatpush3.bf16.msra.mxu0 %v720_v6  ;;  %671 = vmatpush3.bf16.msra.mxu1 %v724_v10  ;;  %v432_v3 = vld [vmem:[%s1101_s8] sm:$0x3]  ;;  %s873_s8 = scalar_lea.vmem %s579_s20, 128 }
  0x6a   :  { %684 = vmatprep.subr.bf16.mxu0 %v912_v0  ;;  %672 = vmatprep.subr.bf16.mxu1 %v912_v0  ;;  %p874_p12 = scmp.ne.s32.totalorder %s579_s20, %s873_s8  ;;  %p879_p0 = scmp.lt.s32.totalorder %s873_s8, %s873_s8 }
  0x6c   :  { %661 = vmatmul.mubr.msk.bf16.vlgmr.msra.gmra.mrb[0].mxu0 %vm144_vm1, %v104_v9  ;;  %p880_p1 = por %p879_p0, %p878_p13 }
  0x6d   :  { %700 = vmatprep.mubr.msk.bf16.mxu0 %vm913_vm0, %v912_v0  ;;  %673 = vmatpush3.bf16.msra.mxu1 %v725_v11 }
  0x6e   :  { %674 = vmatprep.subr.bf16.mxu1 %v912_v0  ;;  %685 = vmatpush3.bf16.msra.mxu0 %v729_v15  ;;  %p881_p2 = pnand %p880_p1, %p874_p12 }
  0x6f   :  { %686 = vmatprep.subr.bf16.mxu0 %v912_v0 }
  0x71   :  { %675 = vmatpush3.bf16.msra.mxu1 %v726_v12 }
  0x72   :  { %676 = vmatprep.subr.bf16.mxu1 %v912_v0  ;;  %687 = vmatpush3.bf16.msra.mxu0 %v730_v16 }
  0x73   :  { %688 = vmatprep.subr.bf16.mxu0 %v912_v0 }
  0x75   :  { %677 = vmatpush3.bf16.msra.mxu1 %v727_v13 }
  0x76   :  { %678 = vmatprep.subr.bf16.mxu1 %v912_v0  ;;  %689 = vmatpush3.bf16.msra.mxu0 %v731_v17 }
  0x77   :  { %690 = vmatprep.subr.bf16.mxu0 %v912_v0 }
  0x79   :  { %679 = vmatpush3.bf16.msra.mxu1 %v728_v14  ;;  %v565_v14 = vld [vmem:[%s1102_s9] sm:$0xff] }
  0x7a   :  { %691 = vmatpush3.bf16.msra.mxu0 %v732_v18  ;;  %524 = vmatprep.subr.bf16.mxu1 %v739_v32 }
  0x7b   :  { %692 = vmatprep.subr.bf16.mxu0 %v912_v0 }
  0x7e   :  { %693 = vmatpush3.bf16.msra.mxu0 %v733_v19 }
  0x7f   :  { %694 = vmatprep.subr.bf16.mxu0 %v912_v0 }
  0x82   :  { %695 = vmatpush3.bf16.msra.mxu0 %v734_v20 }
  0x83   :  { %696 = vmatprep.subr.bf16.mxu0 %v912_v0 }
  0x86   :  { %697 = vmatpush3.bf16.msra.mxu0 %v735_v29 }
  0x87   :  { %698 = vmatprep.subr.bf16.mxu0 %v912_v0  ;;  %v434_v0 = vlaneseq }
  0x89   :  { %v435_v1 = vshrl.u32 %v434_v0, 7 }
  0x8a   :  { %699 = vmatpush3.bf16.msra.mxu0 %v736_v30 }
  0x8b   :  { %v440_v2 = vsub.s32 1, %v435_v1  ;;  %v436_v12 = vsub.s32 0, %v435_v1 }
  0x8d   :  { %v441_v4 = vrot.slane %v432_v3, %v440_v2  ;;  %v437_v13 = vrot.slane %v432_v3, %v436_v12 }
 0x13f   :  { %v182_v22 = vpop.f32.mrb[0].mxu0 }
 0x140   :  { %v183_v23 = vadd.f32 %v589_v21, %v182_v22  ;;  %v662_v24 = vpop.f32.mrb[1].mxu0 }
 0x141   :  { %v185_v25 = vpop.f32.mrb[2].mxu0 }
 0x142   :  { %v188_v26 = vmax.f32 %v183_v23, 0.0  ;;  %v663_v27 = vpop.f32.mrb[3].mxu0 }
 0x144   :  { %v189_v28 = vpack.c.bf16 %v188_v26, %v188_v26 }
 0x146   :  { %681 = vmatmul.mubr.bf16.vlgmr.msra.gmra.mrb[0].mxu1 %v189_v28 }
 0x147   :  { %525 = vmatpush1.bf16.msra.mxu1 %v737_v31  ;;  %556 = vmatprep.mubr.bf16.mxu1 %v914_v55 }
 0x148   :  { %526 = vmatprep.subr.bf16.mxu1 %v742_v33 }
 0x14b   :  { %527 = vmatpush1.bf16.msra.mxu1 %v740_v34 }
 0x14c   :  { %528 = vmatprep.subr.bf16.mxu1 %v745_v35 }
 0x14f   :  { %529 = vmatpush1.bf16.msra.mxu1 %v743_v36 }
 0x150   :  { %530 = vmatprep.subr.bf16.mxu1 %v748_v37 }
 0x153   :  { %531 = vmatpush1.bf16.msra.mxu1 %v746_v38 }
 0x154   :  { %532 = vmatprep.subr.bf16.mxu1 %v751_v39 }
 0x157   :  { %533 = vmatpush1.bf16.msra.mxu1 %v749_v40 }
 0x158   :  { %534 = vmatprep.subr.bf16.mxu1 %v754_v41 }
 0x15b   :  { %535 = vmatpush1.bf16.msra.mxu1 %v752_v42 }
 0x15c   :  { %536 = vmatprep.subr.bf16.mxu1 %v757_v43 }
 0x15f   :  { %537 = vmatpush1.bf16.msra.mxu1 %v755_v44 }
 0x160   :  { %538 = vmatprep.subr.bf16.mxu1 %v760_v53 }
 0x163   :  { %539 = vmatpush1.bf16.msra.mxu1 %v758_v54 }
 0x219   :  { %v295_v46 = vpop.f32.mrb[0].mxu1 }
 0x21a   :  { %v296_v47 = vadd.f32 %v595_v45, %v295_v46  ;;  %v682_v48 = vpop.f32.mrb[1].mxu1 }
 0x21b   :  { %v298_v49 = vpop.f32.mrb[2].mxu1 }
 0x21c   :  { %v301_v50 = vmax.f32 %v296_v47, 0.0  ;;  %v683_v51 = vpop.f32.mrb[3].mxu1 }
 0x21e   :  { %v302_v52 = vpack.c.bf16 %v301_v50, %v301_v50 }
 0x220   :  { %701 = vmatmul.mubr.bf16.vlgmr.msra.gmra.mrb[4].mxu0 %v302_v52 }
 0x2f3   :  { %v408_v57 = vpop.f32.mrb[4].mxu0 }
 0x2f4   :  { %v409_v58 = vadd.f32 %v604_v56, %v408_v57  ;;  %v702_v59 = vpop.f32.mrb[5].mxu0 }
 0x2f5   :  { %v411_v60 = vpop.f32.mrb[6].mxu0 }
 0x2f6   :  { %v414_v61 = vmax.f32 %v409_v58, 0.0  ;;  %v703_v62 = vpop.f32.mrb[7].mxu0 }
 0x2f8   :  { %v415_v63 = vpack.c.bf16 %v414_v61, %v414_v61 }
 0x2fa   :  { %557 = vmatmul.mubr.bf16.vlgmr.msra.gmra.mrb[4].mxu1 %v415_v63 }
 0x3cd   :  { %v558_v5 = vpop.f32.mrb[4].mxu1 }
 0x3ce   :  { %v560_v6 = vpop.f32.mrb[5].mxu1  ;;  %v559_v16 = vadd.f32 %v558_v5, %v437_v13 }
 0x3cf   :  { %v561_v7 = vadd.f32 %v560_v6, %v441_v4  ;;  %v562_v8 = vpop.f32.mrb[6].mxu1 }
 0x3d0   :  { %v563_v9 = vpop.f32.mrb[7].mxu1 }
 0x3d1   :  { %v566_v10 = vmul.f32 0.5, %v561_v7 }
 0x3d3   :  { %v567_v11 = vmul.f32 1.442695, %v566_v10 }
 0x3d5   :  { %761 = vpow2.f32 %v567_v11 }
 0x3df   :  { %v762_v15 = vpop.eup %761 }
 0x3e0   :  { %v569_v17 = vmul.f32 %v762_v15, %v565_v14 }
 0x3e2   :  { %v570_v18 = vadd.f32 %v569_v17, %v559_v16 }
 0x3e4   :  { %571 = vst [vmem:[#allocation11] sm:$0xff] %v570_v18 }
 0x3e5   :  { %884 = shalt.err (!%p881_p2)
}
 0x3e6   :  { %s885_s30 = scalar_lea.hbm %s1103_s10, 128 }
 0x3e7   :  { %p886_p3 = scmp.ne.s32.totalorder %s1103_s10, %s885_s30  ;;  %p889_p4 = scmp.lt.u32.totalorder %s885_s30, %s1103_s10 }
 0x3e9   :  { %p891_p5 = pnand %p889_p4, %p886_p3 }
 0x3eb   :  { %894 = shalt.err (!%p891_p5)
}
 0x3ec   :  { %581 = dma.vmem_to_hbm [thread:$0]  %s579_s20, 128, %s1103_s10, [#allocation4]  }
 0x3ed   :  { %901 = dma.done.wait [#allocation4], 128  }
 0x3ee   :  { %902 = vsyncadd [#allocation4], 4294967168 }
 0x3ef   :  { %585 = vsyncpa [#allocation3], 1 }
 0x3f0   :  { %586 = vsyncpa [#allocation6], 1 }
 0x3f1   :  { %587 = vsyncpa [#allocation9], 1 }
 0x3f2   :  { %588 = vsyncpa [#allocation4], 1 }

</bundles_post_ra>
